<compile_context>
chip_gen: v5e
topology: v5e:2x2
jax: 0.10.0
libtpu: 0.0.40
codegen_flags: <defaults>
</compile_context>

<pallas_src>
import functools

import jax
import jax.numpy as jnp
import numpy as np
from jax.experimental import pallas as pl
from jax.experimental.pallas import tpu as pltpu


def _round_up(n, m):
    return ((n + m - 1) // m) * m


def _vmem_limits():
    """(vmem_limit_bytes, per-step block budget), generation aware."""
    cap = None
    try:
        cap = int(pltpu.get_tpu_info().vmem_capacity_bytes)
    except Exception:
        cap = None
    if cap is None:
        try:
            kind = jax.devices()[0].device_kind.lower()
        except Exception:
            kind = ""
        cap = 64 * 1024 * 1024 if "v7" in kind else 128 * 1024 * 1024
    limit = min(int(cap * 0.60), 96 * 1024 * 1024)   # ~38 MiB on v7x, ~77 MiB on v5e/v6e
    budget = limit // 2                              # headroom for double-buffering etc.
    return limit, budget


def _mxu_width():
    """Native MXU tile width: 128 on v5e (and unknown), 256 on v6e/v7x."""
    try:
        kind = jax.devices()[0].device_kind.lower()
    except Exception:
        kind = ""
    return 256 if ("v6" in kind or "v7" in kind) else 128


def _per_batch_vmem_bytes(cp, t, pack, in_bytes, out_bytes, mm_bytes, unitvar):
    """Honest per-batch-element VMEM footprint per grid step."""
    b = 0
    b += 2 * cp * t * in_bytes           # double-buffered input block
    b += 2 * cp * cp * out_bytes         # double-buffered output block
    b += 2 * cp * t * 4                  # f32 upcast + centered slab
    if mm_bytes != 4:
        b += cp * t * mm_bytes           # bf16 matmul-operand copy
    if unitvar:
        b += cp * t * 4                  # variance / rescale temporary
    b += (pack + 2) * cp * cp * 4        # packed Gram tile + extracted diag blocks
    return b


def _pick_block(b, cp, t, pack, in_bytes, out_bytes, mm_bytes, unitvar, budget):
    """Batch block size bb (multiple of pack) and possibly reduced pack."""
    per_b = _per_batch_vmem_bytes(cp, t, pack, in_bytes, out_bytes, mm_bytes, unitvar)
    bb = max(1, min(b, budget // max(per_b, 1)))
    # Keep >= ~4 grid steps (pipeline overlap / both TCs on v7x), but never
    # shrink below the MXU packing factor -- packing is the bigger win.
    bb = min(bb, max(pack, -(-b // 4)))
    if bb >= pack:
        bb = (bb // pack) * pack
    else:
        pack = bb                        # VMEM-forced: reduce the packing
    return bb, pack


def _make_cov_kernel(alpha, unitvar, n_t, pack, mm_dtype):
    inv_t = np.float32(1.0 / n_t)
    inv_tm1 = np.float32(1.0 / max(n_t - 1, 1))

    def kernel(x_ref, o_ref):
        # x_ref view: (bbg, pack*cp, T) -- `pack` batch elements packed along
        # the sublane axis (done in the wrapper, free in HBM).
        bbg, rows, _ = x_ref.shape
        cp = rows // pack

        # Center along the pooling (lane) axis; reductions in f32.
        x = x_ref[...].astype(jnp.float32)
        mean = jnp.sum(x, axis=-1, keepdims=True) * inv_t
        x0 = x - mean

        if unitvar:
            # torch.Tensor.std is unbiased (correction=1).  Zero-variance rows:
            # rsqrt(0)=inf, 0*inf=NaN, nan_to_num->0 == torch (0/0=NaN->0).
            var = jnp.sum(x0 * x0, axis=-1, keepdims=True) * inv_tm1
            x0 = jnp.nan_to_num(x0 * jax.lax.rsqrt(var), nan=0.0)

        # Gram matrix of the packed slab on the MXU, contracting T (minor dim
        # of both operands) directly; f32 accumulation.
        lhs = x0.astype(mm_dtype)
        gram = jax.lax.dot_general(
            lhs, lhs,
            dimension_numbers=(((2,), (2,)), ((0,), (0,))),
            preferred_element_type=jnp.float32,
        )                                                  # (bbg, rows, rows)

        # Keep only the `pack` diagonal (cp, cp) blocks; cross-batch blocks
        # are discarded.  cp is a multiple of 8 so sublane offsets are aligned.
        blocks = [
            gram[:, i * cp:(i + 1) * cp, i * cp:(i + 1) * cp]
            for i in range(pack)
        ]
        c = jnp.stack(blocks, axis=1) * inv_t              # (bbg, pack, cp, cp)

        if alpha is not None:
            row = jax.lax.broadcasted_iota(jnp.int32, (cp, cp), 0)
            col = jax.lax.broadcasted_iota(jnp.int32, (cp, cp), 1)
            c = c + jnp.where(row == col, jnp.float32(alpha), jnp.float32(0.0))

        o_ref[...] = c.reshape(bbg * pack, cp, cp).astype(o_ref.dtype)

    return kernel


@functools.partial(jax.jit, static_argnames=("alpha", "unitvar", "mxu_bf16"))
def covariance_pool(x, alpha=None, unitvar=False, mxu_bf16=False):
    """Pallas TPU implementation of CovariancePool.forward.

    x: (..., C, T) float array.  Returns (..., C, C) in x.dtype.
    """
    *lead, n_ch, n_t = x.shape
    b = int(np.prod(lead)) if lead else 1
    x3 = x.reshape(b, n_ch, n_t)

    in_bytes = jnp.dtype(x.dtype).itemsize
    out_dtype = x.dtype
    out_bytes = jnp.dtype(out_dtype).itemsize
    # bf16 inputs keep bf16 MXU operands (f32 accumulate).  For f32 inputs the
    # bf16-operand path is opt-in (precision-sensitive op).
    mm_dtype = jnp.bfloat16 if (x.dtype == jnp.bfloat16 or mxu_bf16) else jnp.float32
    mm_bytes = jnp.dtype(mm_dtype).itemsize

    # Pad channels to a sublane multiple so the batch-packing reshape keeps
    # (8,128) tiles intact.  Padded (zero) channels give zero covariance
    # rows/cols and are sliced off below.
    cp = max(_round_up(n_ch, 8), 8)

    vmem_limit, vmem_budget = _vmem_limits()
    mxu_n = _mxu_width()
    pack = max(1, min(mxu_n // cp, b))

    bb, pack = _pick_block(b, cp, n_t, pack, in_bytes, out_bytes, mm_bytes,
                           unitvar, vmem_budget)
    assert bb % pack == 0
    bbg = bb // pack                      # packed groups per grid step

    # Pad batch so the grid divides evenly (handles prime / awkward B without
    # collapsing to bb=1); padded all-zero batches are sliced off afterwards.
    grid = -(-b // bb)
    b_pad = grid * bb
    pad_b, pad_c = b_pad - b, cp - n_ch
    if pad_b or pad_c:
        x3 = jnp.pad(x3, ((0, pad_b), (0, pad_c), (0, 0)))

    # Pack `pack` batch elements along the sublane axis (free, row-major HBM
    # reshape): (b_pad, cp, T) -> (b_pad/pack, pack*cp, T).
    x_packed = x3.reshape(b_pad // pack, pack * cp, n_t)

    kernel = _make_cov_kernel(alpha, unitvar, n_t, pack, mm_dtype)

    out_pad = pl.pallas_call(
        kernel,
        out_shape=jax.ShapeDtypeStruct((b_pad, cp, cp), out_dtype),
        grid_spec=pltpu.PrefetchScalarGridSpec(
            num_scalar_prefetch=0,
            grid=(grid,),
            in_specs=[
                pl.BlockSpec((bbg, pack * cp, n_t), lambda i: (i, 0, 0)),
            ],
            out_specs=pl.BlockSpec((bb, cp, cp), lambda i: (i, 0, 0)),
        ),
        compiler_params=pltpu.CompilerParams(
            dimension_semantics=("parallel",),
            vmem_limit_bytes=vmem_limit,
        ),
    )(x_packed)

    out = out_pad[:b, :n_ch, :n_ch]
    return out.reshape(*lead, n_ch, n_ch) if lead else out.reshape(n_ch, n_ch)


def _reference(x, alpha=None, unitvar=False):
    """Pure-JAX reference mirroring the PyTorch forward (f32 math)."""
    x = x.astype(jnp.float32)
    t = x.shape[-1]
    x0 = x - jnp.mean(x, axis=-1, keepdims=True)
    if unitvar:
        std = jnp.sqrt(jnp.sum(x0 * x0, axis=-1, keepdims=True) / max(t - 1, 1))
        x0 = jnp.nan_to_num(x0 / std, nan=0.0)
    c = jnp.einsum("...ct,...dt->...cd", x0, x0,
                   precision=jax.lax.Precision.HIGHEST) / t
    if alpha is not None:
        c = c + alpha * jnp.eye(c.shape[-1], dtype=c.dtype)
    return c


if __name__ == "__main__":
    key = jax.random.PRNGKey(0)
    k1, k2, k3 = jax.random.split(key, 3)

    # Small default config (alpha=None, unitvar=False); C=4 exercises the
    # channel padding (4 -> 8) and batch packing.
    B, C, T = 2, 4, 16
    x = jax.random.normal(k1, (B, C, T), dtype=jnp.float32)
    out = covariance_pool(x)
    jax.block_until_ready(out)
    assert out.shape == (B, C, C)
    np.testing.assert_allclose(np.asarray(out), np.asarray(_reference(x)),
                               rtol=1e-4, atol=1e-5)

    # Awkward batch (batch padding + multi-step grid + MXU packing) with
    # diagonal loading and unit-variance normalization.
    B2, C2, T2 = 20, 6, 32
    x2 = jax.random.normal(k2, (B2, C2, T2), dtype=jnp.float32)
    out2 = covariance_pool(x2, alpha=0.1, unitvar=True)
    jax.block_until_ready(out2)
    ref2 = _reference(x2, alpha=0.1, unitvar=True)
    np.testing.assert_allclose(np.asarray(out2), np.asarray(ref2),
                               rtol=1e-4, atol=1e-4)

    # bf16 input exercises the bf16-MXU (f32 accumulate) path; C=22 -> 24.
    B3, C3, T3 = 4, 22, 64
    x3 = jax.random.normal(k3, (B3, C3, T3), dtype=jnp.bfloat16)
    out3 = covariance_pool(x3, alpha=0.1, unitvar=True)
    jax.block_until_ready(out3)
    ref3 = _reference(x3.astype(jnp.float32), alpha=0.1, unitvar=True)
    np.testing.assert_allclose(np.asarray(out3, dtype=np.float32),
                               np.asarray(ref3), rtol=5e-2, atol=5e-2)

    print("KERNEL_OK")
</pallas_src>

<mosaic_0001>
module attributes {stable_mosaic.version = 11 : i64} {
  func.func @kernel(%arg0: i32, %arg1: memref<1x16x16xf32, #tpu.memory_space<vmem>>, %arg2: memref<2x8x8xf32, #tpu.memory_space<vmem>>) attributes {dimension_semantics = [#tpu.dimension_semantics<parallel>], iteration_bounds = array<i64: 1>, scalar_prefetch = 0 : i64, scratch_operands = 0 : i64, tpu.core_type = #tpu.core_type<tc>, window_params = [{transform_indices = @transform_0, window_bounds = array<i64: 1, 16, 16>}, {transform_indices = @transform_1, window_bounds = array<i64: 2, 8, 8>}]} {
    %c0 = arith.constant 0 : index
    %c0_0 = arith.constant 0 : index
    %c0_1 = arith.constant 0 : index
    %0 = vector.load %arg1[%c0, %c0_0, %c0_1] : memref<1x16x16xf32, #tpu.memory_space<vmem>>, vector<1x16x16xf32>
    %cst = arith.constant dense<0.000000e+00> : vector<1x16xf32>
    %1 = vector.multi_reduction <add>, %0, %cst [2] : vector<1x16x16xf32> to vector<1x16xf32>
    %2 = vector.shape_cast %1 : vector<1x16xf32> to vector<1x16x1xf32>
    %cst_2 = arith.constant 6.250000e-02 : f32
    %3 = vector.broadcast %cst_2 : f32 to vector<1x16x1xf32>
    %4 = arith.mulf %2, %3 : vector<1x16x1xf32>
    %5 = vector.broadcast %4 : vector<1x16x1xf32> to vector<1x16x16xf32>
    %6 = arith.subf %0, %5 : vector<1x16x16xf32>
    %cst_3 = arith.constant dense<0.000000e+00> : vector<1x16x16xf32>
    %7 = tpu.matmul %6, %6, %cst_3 {dimension_numbers = #tpu.dot_dimension_numbers<[2], [2], [1], [1], [0, 0, 0, 1, 1, 1], [0], [0]>} : vector<1x16x16xf32>, vector<1x16x16xf32>, vector<1x16x16xf32> -> vector<1x16x16xf32>
    %8 = vector.extract_strided_slice %7 {offsets = [0, 0, 0], sizes = [1, 8, 8], strides = [1, 1, 1]} : vector<1x16x16xf32> to vector<1x8x8xf32>
    %9 = vector.extract_strided_slice %7 {offsets = [0, 8, 8], sizes = [1, 8, 8], strides = [1, 1, 1]} : vector<1x16x16xf32> to vector<1x8x8xf32>
    %10 = vector.shape_cast %8 : vector<1x8x8xf32> to vector<1x1x8x8xf32>
    %11 = vector.shape_cast %9 : vector<1x8x8xf32> to vector<1x1x8x8xf32>
    %12 = tpu.concatenate %10, %11 in 1 : vector<1x1x8x8xf32>, vector<1x1x8x8xf32> -> vector<1x2x8x8xf32>
    %cst_4 = arith.constant 6.250000e-02 : f32
    %13 = vector.broadcast %cst_4 : f32 to vector<1x2x8x8xf32>
    %14 = arith.mulf %12, %13 : vector<1x2x8x8xf32>
    %15 = vector.shape_cast %14 : vector<1x2x8x8xf32> to vector<2x8x8xf32>
    %c0_5 = arith.constant 0 : index
    %c0_6 = arith.constant 0 : index
    %c0_7 = arith.constant 0 : index
    %16 = vector.load %arg2[%c0_5, %c0_6, %c0_7] : memref<2x8x8xf32, #tpu.memory_space<vmem>>, vector<2x8x8xf32>
    tpu.vector_store %arg2[%c0_5, %c0_6, %c0_7], %15 {strides = array<i32>} : memref<2x8x8xf32, #tpu.memory_space<vmem>>, vector<2x8x8xf32>,
    return
  }
  func.func @transform_0(%arg0: i32) -> (i32, i32, i32) {
    %c0_i32 = arith.constant 0 : i32
    %c0_i32_0 = arith.constant 0 : i32
    %c0_i32_1 = arith.constant 0 : i32
    return %arg0, %c0_i32, %c0_i32_0 : i32, i32, i32
  }
  func.func @transform_1(%arg0: i32) -> (i32, i32, i32) {
    %c0_i32 = arith.constant 0 : i32
    %c0_i32_0 = arith.constant 0 : i32
    %c0_i32_1 = arith.constant 0 : i32
    return %arg0, %c0_i32, %c0_i32_0 : i32, i32, i32
  }
}

</mosaic_0001>

<bundles_post_ra>
// kernel: covariance_pool.1
= control target key start
LH: loop header
LB: loop body
LE: loop exit
PB: predicated region body
PF: predicated region fallthrough
CT: control target
= control target key end

     0   :  { %vm10_vm0 = vcmask 130048   ;;  %vm56_vm1 = vcmask 64512   ;;  %s101_s0 = inlined_call_operand.vmem [shape: f32[1,16,16], index: 0, kind: input, shape index: {}]   ;;  %s102_s1 = inlined_call_operand.vmem [shape: f32[2,8,8], index: 1, kind: output, shape index: {}]  }
   0x1   :  { %v9_v0 = vld [vmem:[%s101_s0 + $0x8] sm:$0xff]  ;;  %v8_v2 = vld [vmem:[%s101_s0] sm:$0xff]  ;;  %s70_s0 = smov 120  }
   0x2   :  { %v14_v1 = vsel %vm10_vm0, %v9_v0, 0.0  ;;  %v11_v3 = vsel %vm10_vm0, %v8_v2, 0.0 }
   0x3   :  { %15 = vadd.xlane.f32.xlu0 %v14_v1 }
   0xb   :  { %12 = vadd.xlane.f32.xlu0 %v11_v3 }
  0x76   :  { %v16_v4 = vpop.xlane.xlu0 %15 }
  0x77   :  { %v18_v5 = vmul.f32 0.0625, %v16_v4 }
  0x79   :  { %v20_v6 = vsub.f32 %v9_v0, %v18_v5 }
  0x7b   :  { %63 = vmatpush.xpose.msk.msra.mxu0 %vm10_vm0, %v20_v6  ;;  %67 = vmatpush.xpose.msk.msra.mxu1 %vm10_vm0, %v20_v6 }
  0x7e   :  { %v13_v7 = vpop.xlane.xlu0 %12 }
  0x7f   :  { %v17_v8 = vmul.f32 0.0625, %v13_v7 }
  0x81   :  { %v19_v9 = vsub.f32 %v8_v2, %v17_v8 }
  0x83   :  { %64 = vmatpush.xpose.msk.msra.mxu0 %vm10_vm0, %v19_v9  ;;  %68 = vmatpush.xpose.msk.msra.mxu1 %vm10_vm0, %v19_v9 }
  0x86   :  { %65 = vmatmul.msk.f32.vlgmr.msra.gmra.mxu0 %vm10_vm0, %v19_v9  ;;  %66 = vmatmul.msk.f32.vlgmr.msra.gmra.mxu1 %vm10_vm0, %v20_v6 }
 0x103   :  { %v44_v10 = vpop.f32.mrf.mxu0  ;;  %v47_v11 = vpop.f32.mrf.mxu1 }
 0x104   :  { %v54_v12 = vmul.f32 0.0625, %v44_v10  ;;  %51 = vrot.lane.b32.xlu1 %v47_v11, %s70_s0 }
 0x106   :  { %57 = vst.msk [vmem:[%s102_s1] sm:$0xff] %vm56_vm1, %v54_v12 }
 0x176   :  { %v52_v13 = vpop.permute.xlu1 %51 }
 0x177   :  { %v55_v14 = vmul.f32 0.0625, %v52_v13 }
 0x179   :  { %58 = vst.msk [vmem:[%s102_s1 + $0x8] sm:$0xff] %vm56_vm1, %v55_v14 }

</bundles_post_ra>
